<compile_context>
chip_gen: v5e
topology: v5e:2x2
jax: 0.10.0
libtpu: 0.0.40
codegen_flags: <defaults>
</compile_context>

<pallas_src>
import functools

import jax
import jax.numpy as jnp
from jax.experimental import pallas as pl
from jax.experimental.pallas import tpu as pltpu


def _softplus(x):
    # numerically-stable softplus using only exp/log/abs/max (safe Mosaic lowering)
    return jnp.maximum(x, 0.0) + jnp.log(1.0 + jnp.exp(-jnp.abs(x)))


def _ray_march_kernel(colors_ref, dens_ref, dep_ref, rgbd_ref, w_ref,
                      scan_a, scan_b, *, white_back):
    f32 = jnp.float32
    num_c = colors_ref.shape[0]

    # ---- depths: deltas + raw pairwise sums (the 0.5 is folded into w_half) ----
    dep = dep_ref[...].astype(f32)                        # (S, TN)
    deltas = dep[1:, :] - dep[:-1, :]                     # (S-1, TN)
    dep_pair = dep[1:, :] + dep[:-1, :]                   # (S-1, TN)

    # per-tile, per-lane depth stats; the global clamp range is reduced outside
    rgbd_ref[num_c + 1:num_c + 2, :] = jnp.min(dep, axis=0, keepdims=True)
    rgbd_ref[num_c + 2:num_c + 3, :] = jnp.max(dep, axis=0, keepdims=True)
    del dep

    # ---- densities -> softplus(mid - 1) -> alpha  (clamp_mode == 'softplus') ----
    dens = dens_ref[...].astype(f32)                      # (S, TN)
    dens_mid = (dens[1:, :] + dens[:-1, :]) * 0.5 - 1.0   # (S-1, TN)
    del dens
    dens_mid = _softplus(dens_mid)
    alpha = 1.0 - jnp.exp(-dens_mid * deltas)             # (S-1, TN)
    term = 1.0 - alpha + 1e-10                            # (S-1, TN)

    # ---- dense exclusive cumprod (transmittance) ----
    # Hillis–Steele scan ping-ponged between two VMEM scratch buffers.  The
    # shift-by-d is expressed as an offset ref slice, so each of the
    # ceil(log2(S-1)) steps is a dense lane-wide multiply (no per-row serial
    # chain, no sublane concatenate, no per-row masked stores).
    sm1 = alpha.shape[0]
    if sm1 == 1:
        trans = jnp.ones_like(alpha)
    else:
        scan_a[0:1, :] = jnp.ones_like(term[0:1, :])      # exclusive base row
        scan_a[1:sm1, :] = term[0:sm1 - 1, :]
        src, dst = scan_a, scan_b
        d = 1
        while d < sm1:
            dst[d:sm1, :] = src[d:sm1, :] * src[0:sm1 - d, :]
            dst[0:d, :] = src[0:d, :]
            src, dst = dst, src
            d *= 2
        trans = src[...]                                  # trans[i] = prod_{j<i} term[j]

    weights = alpha * trans                               # (S-1, TN)
    w_ref[...] = weights.astype(w_ref.dtype)              # one dense lane-wide store
    w_half = weights * 0.5                                # midpoint 0.5 folded once

    # ---- composite depth (nan -> inf here; clamp to global range outside) ----
    wsum = jnp.sum(weights, axis=0, keepdims=True)        # (1, TN)
    dsum = jnp.sum(w_half * dep_pair, axis=0, keepdims=True)
    cdep = dsum / wsum
    cdep = jnp.where(jnp.isnan(cdep), jnp.inf, cdep)      # nan_to_num(nan=inf)
    rgbd_ref[num_c:num_c + 1, :] = cdep

    # ---- composite rgb, channel by channel (keeps live vregs bounded) ----
    for c in range(num_c):
        col = colors_ref[c].astype(f32)                   # (S, TN)
        acc = jnp.sum(w_half * (col[1:, :] + col[:-1, :]), axis=0, keepdims=True)
        if white_back:
            acc = acc + 1.0 - wsum
        rgbd_ref[c:c + 1, :] = acc * 2.0 - 1.0


def _choose_tile_rays(n_rays, vmem_bytes_per_ray, *, vmem_budget=10 << 20, max_tile=8192):
    """Largest 128-multiple tile dividing n_rays under a VMEM budget; prefer an
    even number of grid steps so v7x's two TensorCores stay balanced."""
    cap = (vmem_budget // max(vmem_bytes_per_ray, 1)) // 128 * 128
    cap = max(128, min(max_tile, cap))
    candidates = [t for t in range(128, min(cap, n_rays) + 1, 128) if n_rays % t == 0]
    if not candidates:
        return n_rays                      # single full-width tile (always a legal block)
    even_steps = [t for t in candidates if (n_rays // t) % 2 == 0]
    return even_steps[-1] if even_steps else candidates[-1]


def mip_ray_marcher(colors, densities, depths, rendering_options, *,
                    tile_rays=None, weights_dtype=jnp.float32):
    """colors (B,R,S,C), densities (B,R,S,1), depths (B,R,S,1) -> matches PyTorch forward."""
    assert rendering_options['clamp_mode'] == 'softplus', \
        'MipRayMarcher only supports `clamp_mode`=`softplus`!'
    white_back = bool(rendering_options.get('white_back', False))

    B, R, S, C = colors.shape
    assert S >= 2, 'need at least 2 samples per ray'
    N = B * R

    # VMEM footprint per ray: double-buffered I/O tiles + ~a dozen (S,TN) f32
    # temporaries (incl. the two scan scratch buffers).
    io_bytes = (C * S * colors.dtype.itemsize
                + S * densities.dtype.itemsize
                + S * depths.dtype.itemsize
                + (C + 3) * 4
                + (S - 1) * jnp.dtype(weights_dtype).itemsize)
    vmem_bytes_per_ray = 2 * io_bytes + 14 * S * 4

    TN = (_choose_tile_rays(N, vmem_bytes_per_ray) if tile_rays is None
          else min(int(tile_rays), N))
    assert N % TN == 0
    assert (TN % 128 == 0) or (TN == N)    # lane-dense blocks

    # Lane-dense layout: rays on lanes, samples on sublanes (channel-major colors).
    # TODO(synk): these transposes are an extra HBM round trip on the inputs; they
    # vanish if upstream supplies colors as (C,S,N) and densities/depths as (S,N).
    colors_l = jnp.transpose(colors.reshape(N, S, C), (2, 1, 0))   # (C, S, N)
    dens_l = jnp.transpose(densities.reshape(N, S), (1, 0))        # (S, N)
    dep_l = jnp.transpose(depths.reshape(N, S), (1, 0))            # (S, N)

    kernel = functools.partial(_ray_march_kernel, white_back=white_back)

    rgbd, w_sn = pl.pallas_call(
        kernel,
        out_shape=(
            jax.ShapeDtypeStruct((C + 3, N), jnp.float32),         # rgb | depth | dmin | dmax
            jax.ShapeDtypeStruct((S - 1, N), weights_dtype),       # weights
        ),
        grid=(N // TN,),
        in_specs=[
            pl.BlockSpec((C, S, TN), lambda i: (0, 0, i)),         # colors (C, S, N)
            pl.BlockSpec((S, TN), lambda i: (0, i)),               # densities (S, N)
            pl.BlockSpec((S, TN), lambda i: (0, i)),               # depths (S, N)
        ],
        out_specs=(
            pl.BlockSpec((C + 3, TN), lambda i: (0, i)),           # merged rgb/depth/stats
            pl.BlockSpec((S - 1, TN), lambda i: (0, i)),           # weights (S-1, N)
        ),
        scratch_shapes=[
            pltpu.VMEM((S - 1, TN), jnp.float32),                  # scan ping
            pltpu.VMEM((S - 1, TN), jnp.float32),                  # scan pong
        ],
        compiler_params=pltpu.CompilerParams(dimension_semantics=("parallel",)),
    )(colors_l, dens_l, dep_l)

    # finish the tiny global depth-range reduction + clamp outside the kernel
    dmin = jnp.min(rgbd[C + 1])
    dmax = jnp.max(rgbd[C + 2])
    composite_rgb = jnp.transpose(rgbd[:C], (1, 0)).reshape(B, R, C)
    composite_depth = jnp.clip(rgbd[C], dmin, dmax).reshape(B, R, 1)
    # TODO(synk): this transpose is another HBM round trip; skip it if the consumer
    # (e.g. importance resampling) can take sample-major (S-1, N) weights directly.
    weights = jnp.transpose(w_sn, (1, 0)).reshape(B, R, S - 1, 1)
    return composite_rgb, composite_depth, weights


def _reference(colors, densities, depths, rendering_options):
    # pure-JAX transcription of the PyTorch run_forward (for verification only)
    deltas = depths[:, :, 1:] - depths[:, :, :-1]
    colors_mid = (colors[:, :, :-1] + colors[:, :, 1:]) / 2
    densities_mid = (densities[:, :, :-1] + densities[:, :, 1:]) / 2
    depths_mid = (depths[:, :, :-1] + depths[:, :, 1:]) / 2
    assert rendering_options['clamp_mode'] == 'softplus'
    densities_mid = jax.nn.softplus(densities_mid - 1)
    density_delta = densities_mid * deltas
    alpha = 1 - jnp.exp(-density_delta)
    alpha_shifted = jnp.concatenate(
        [jnp.ones_like(alpha[:, :, :1]), 1 - alpha + 1e-10], axis=-2)
    weights = alpha * jnp.cumprod(alpha_shifted, axis=-2)[:, :, :-1]
    composite_rgb = jnp.sum(weights * colors_mid, axis=-2)
    weight_total = weights.sum(2)
    composite_depth = jnp.sum(weights * depths_mid, axis=-2) / weight_total
    composite_depth = jnp.nan_to_num(composite_depth, nan=jnp.inf)
    composite_depth = jnp.clip(composite_depth, jnp.min(depths), jnp.max(depths))
    if rendering_options.get('white_back', False):
        composite_rgb = composite_rgb + 1 - weight_total
    composite_rgb = composite_rgb * 2 - 1
    return composite_rgb, composite_depth, weights


if __name__ == "__main__":
    key = jax.random.PRNGKey(0)
    B, R, S, C = 2, 128, 16, 3          # batch, rays per batch, samples per ray, channels
    k1, k2, k3 = jax.random.split(key, 3)

    colors = jax.random.uniform(k1, (B, R, S, C), dtype=jnp.float32)
    densities = jax.random.normal(k2, (B, R, S, 1), dtype=jnp.float32)
    base = jnp.linspace(2.0, 6.0, S, dtype=jnp.float32).reshape(1, 1, S, 1)
    depths = base + 0.05 * jax.random.uniform(k3, (B, R, S, 1), dtype=jnp.float32)

    for wb in (False, True):
        opts = {'clamp_mode': 'softplus', 'white_back': wb}
        rgb, dep, w = mip_ray_marcher(colors, densities, depths, opts)
        jax.block_until_ready((rgb, dep, w))

        rgb_r, dep_r, w_r = _reference(colors, densities, depths, opts)
        assert rgb.shape == (B, R, C) and dep.shape == (B, R, 1) and w.shape == (B, R, S - 1, 1)
        assert jnp.allclose(rgb, rgb_r, atol=1e-4, rtol=1e-4)
        assert jnp.allclose(dep, dep_r, atol=1e-4, rtol=1e-4)
        assert jnp.allclose(w, w_r.reshape(B, R, S - 1, 1), atol=1e-5, rtol=1e-4)

    print("KERNEL_OK")
</pallas_src>

<mosaic_0001>
module attributes {stable_mosaic.version = 11 : i64} {
  func.func @_ray_march_kernel(%arg0: i32, %arg1: memref<3x16x128xf32, #tpu.memory_space<vmem>>, %arg2: memref<16x128xf32, #tpu.memory_space<vmem>>, %arg3: memref<16x128xf32, #tpu.memory_space<vmem>>, %arg4: memref<6x128xf32, #tpu.memory_space<vmem>>, %arg5: memref<15x128xf32, #tpu.memory_space<vmem>>, %arg6: memref<15x128xf32, #tpu.memory_space<vmem>>, %arg7: memref<15x128xf32, #tpu.memory_space<vmem>>) attributes {dimension_semantics = [#tpu.dimension_semantics<parallel>], iteration_bounds = array<i64: 2>, scalar_prefetch = 0 : i64, scratch_operands = 2 : i64, tpu.core_type = #tpu.core_type<tc>, window_params = [{transform_indices = @transform_0, window_bounds = array<i64: 3, 16, 128>}, {transform_indices = @transform_1, window_bounds = array<i64: 16, 128>}, {transform_indices = @transform_2, window_bounds = array<i64: 16, 128>}, {transform_indices = @transform_3, window_bounds = array<i64: 6, 128>}, {transform_indices = @transform_4, window_bounds = array<i64: 15, 128>}]} {
    %c0 = arith.constant 0 : index
    %c0_0 = arith.constant 0 : index
    %0 = vector.load %arg3[%c0, %c0_0] : memref<16x128xf32, #tpu.memory_space<vmem>>, vector<16x128xf32>
    %1 = vector.extract_strided_slice %0 {offsets = [1, 0], sizes = [15, 128], strides = [1, 1]} : vector<16x128xf32> to vector<15x128xf32>
    %2 = vector.extract_strided_slice %0 {offsets = [0, 0], sizes = [15, 128], strides = [1, 1]} : vector<16x128xf32> to vector<15x128xf32>
    %3 = arith.subf %1, %2 : vector<15x128xf32>
    %4 = vector.extract_strided_slice %0 {offsets = [1, 0], sizes = [15, 128], strides = [1, 1]} : vector<16x128xf32> to vector<15x128xf32>
    %5 = vector.extract_strided_slice %0 {offsets = [0, 0], sizes = [15, 128], strides = [1, 1]} : vector<16x128xf32> to vector<15x128xf32>
    %6 = arith.addf %4, %5 : vector<15x128xf32>
    %cst = arith.constant dense<0x7F800000> : vector<128xf32>
    %7 = vector.multi_reduction <minimumf>, %0, %cst [0] : vector<16x128xf32> to vector<128xf32>
    %8 = vector.shape_cast %7 : vector<128xf32> to vector<1x128xf32>
    %c4 = arith.constant 4 : index
    %c0_1 = arith.constant 0 : index
    %9 = vector.load %arg4[%c4, %c0_1] : memref<6x128xf32, #tpu.memory_space<vmem>>, vector<1x128xf32>
    tpu.vector_store %arg4[%c4, %c0_1], %8 {strides = array<i32>} : memref<6x128xf32, #tpu.memory_space<vmem>>, vector<1x128xf32>,
    %cst_2 = arith.constant dense<0xFF800000> : vector<128xf32>
    %10 = vector.multi_reduction <maximumf>, %0, %cst_2 [0] : vector<16x128xf32> to vector<128xf32>
    %11 = vector.shape_cast %10 : vector<128xf32> to vector<1x128xf32>
    %c5 = arith.constant 5 : index
    %c0_3 = arith.constant 0 : index
    %12 = vector.load %arg4[%c5, %c0_3] : memref<6x128xf32, #tpu.memory_space<vmem>>, vector<1x128xf32>
    tpu.vector_store %arg4[%c5, %c0_3], %11 {strides = array<i32>} : memref<6x128xf32, #tpu.memory_space<vmem>>, vector<1x128xf32>,
    %c0_4 = arith.constant 0 : index
    %c0_5 = arith.constant 0 : index
    %13 = vector.load %arg2[%c0_4, %c0_5] : memref<16x128xf32, #tpu.memory_space<vmem>>, vector<16x128xf32>
    %14 = vector.extract_strided_slice %13 {offsets = [1, 0], sizes = [15, 128], strides = [1, 1]} : vector<16x128xf32> to vector<15x128xf32>
    %15 = vector.extract_strided_slice %13 {offsets = [0, 0], sizes = [15, 128], strides = [1, 1]} : vector<16x128xf32> to vector<15x128xf32>
    %16 = arith.addf %14, %15 : vector<15x128xf32>
    %cst_6 = arith.constant 5.000000e-01 : f32
    %17 = vector.broadcast %cst_6 : f32 to vector<15x128xf32>
    %18 = arith.mulf %16, %17 : vector<15x128xf32>
    %cst_7 = arith.constant 1.000000e+00 : f32
    %19 = vector.broadcast %cst_7 : f32 to vector<15x128xf32>
    %20 = arith.subf %18, %19 : vector<15x128xf32>
    %cst_8 = arith.constant 0.000000e+00 : f32
    %21 = vector.broadcast %cst_8 : f32 to vector<15x128xf32>
    %22 = arith.maximumf %20, %21 : vector<15x128xf32>
    %23 = math.absf %20 : vector<15x128xf32>
    %cst_9 = arith.constant 0.000000e+00 : f32
    %24 = vector.broadcast %cst_9 : f32 to vector<15x128xf32>
    %25 = arith.subf %24, %23 : vector<15x128xf32>
    %26 = math.exp %25 : vector<15x128xf32>
    %cst_10 = arith.constant 1.000000e+00 : f32
    %27 = vector.broadcast %cst_10 : f32 to vector<15x128xf32>
    %28 = arith.addf %27, %26 : vector<15x128xf32>
    %29 = math.log %28 : vector<15x128xf32>
    %30 = arith.addf %22, %29 : vector<15x128xf32>
    %cst_11 = arith.constant 0.000000e+00 : f32
    %31 = vector.broadcast %cst_11 : f32 to vector<15x128xf32>
    %32 = arith.subf %31, %30 : vector<15x128xf32>
    %33 = arith.mulf %32, %3 : vector<15x128xf32>
    %34 = math.exp %33 : vector<15x128xf32>
    %cst_12 = arith.constant 1.000000e+00 : f32
    %35 = vector.broadcast %cst_12 : f32 to vector<15x128xf32>
    %36 = arith.subf %35, %34 : vector<15x128xf32>
    %cst_13 = arith.constant 1.000000e+00 : f32
    %37 = vector.broadcast %cst_13 : f32 to vector<15x128xf32>
    %38 = arith.subf %37, %36 : vector<15x128xf32>
    %cst_14 = arith.constant 1.000000e-10 : f32
    %39 = vector.broadcast %cst_14 : f32 to vector<15x128xf32>
    %40 = arith.addf %38, %39 : vector<15x128xf32>
    %cst_15 = arith.constant 1.000000e+00 : f32
    %41 = vector.broadcast %cst_15 : f32 to vector<1x128xf32>
    %c0_16 = arith.constant 0 : index
    %c0_17 = arith.constant 0 : index
    %42 = vector.load %arg6[%c0_16, %c0_17] : memref<15x128xf32, #tpu.memory_space<vmem>>, vector<1x128xf32>
    tpu.vector_store %arg6[%c0_16, %c0_17], %41 {strides = array<i32>} : memref<15x128xf32, #tpu.memory_space<vmem>>, vector<1x128xf32>,
    %43 = vector.extract_strided_slice %40 {offsets = [0, 0], sizes = [14, 128], strides = [1, 1]} : vector<15x128xf32> to vector<14x128xf32>
    %c1 = arith.constant 1 : index
    %c0_18 = arith.constant 0 : index
    %44 = vector.load %arg6[%c1, %c0_18] : memref<15x128xf32, #tpu.memory_space<vmem>>, vector<14x128xf32>
    tpu.vector_store %arg6[%c1, %c0_18], %43 {strides = array<i32>} : memref<15x128xf32, #tpu.memory_space<vmem>>, vector<14x128xf32>,
    %c1_19 = arith.constant 1 : index
    %c0_20 = arith.constant 0 : index
    %45 = vector.load %arg6[%c1_19, %c0_20] : memref<15x128xf32, #tpu.memory_space<vmem>>, vector<14x128xf32>
    %c0_21 = arith.constant 0 : index
    %c0_22 = arith.constant 0 : index
    %46 = vector.load %arg6[%c0_21, %c0_22] : memref<15x128xf32, #tpu.memory_space<vmem>>, vector<14x128xf32>
    %47 = arith.mulf %45, %46 : vector<14x128xf32>
    %c1_23 = arith.constant 1 : index
    %c0_24 = arith.constant 0 : index
    %48 = vector.load %arg7[%c1_23, %c0_24] : memref<15x128xf32, #tpu.memory_space<vmem>>, vector<14x128xf32>
    tpu.vector_store %arg7[%c1_23, %c0_24], %47 {strides = array<i32>} : memref<15x128xf32, #tpu.memory_space<vmem>>, vector<14x128xf32>,
    %c0_25 = arith.constant 0 : index
    %c0_26 = arith.constant 0 : index
    %49 = vector.load %arg6[%c0_25, %c0_26] : memref<15x128xf32, #tpu.memory_space<vmem>>, vector<1x128xf32>
    %c0_27 = arith.constant 0 : index
    %c0_28 = arith.constant 0 : index
    %50 = vector.load %arg7[%c0_27, %c0_28] : memref<15x128xf32, #tpu.memory_space<vmem>>, vector<1x128xf32>
    tpu.vector_store %arg7[%c0_27, %c0_28], %49 {strides = array<i32>} : memref<15x128xf32, #tpu.memory_space<vmem>>, vector<1x128xf32>,
    %c2 = arith.constant 2 : index
    %c0_29 = arith.constant 0 : index
    %51 = vector.load %arg7[%c2, %c0_29] : memref<15x128xf32, #tpu.memory_space<vmem>>, vector<13x128xf32>
    %c0_30 = arith.constant 0 : index
    %c0_31 = arith.constant 0 : index
    %52 = vector.load %arg7[%c0_30, %c0_31] : memref<15x128xf32, #tpu.memory_space<vmem>>, vector<13x128xf32>
    %53 = arith.mulf %51, %52 : vector<13x128xf32>
    %c2_32 = arith.constant 2 : index
    %c0_33 = arith.constant 0 : index
    %54 = vector.load %arg6[%c2_32, %c0_33] : memref<15x128xf32, #tpu.memory_space<vmem>>, vector<13x128xf32>
    tpu.vector_store %arg6[%c2_32, %c0_33], %53 {strides = array<i32>} : memref<15x128xf32, #tpu.memory_space<vmem>>, vector<13x128xf32>,
    %c0_34 = arith.constant 0 : index
    %c0_35 = arith.constant 0 : index
    %55 = vector.load %arg7[%c0_34, %c0_35] : memref<15x128xf32, #tpu.memory_space<vmem>>, vector<2x128xf32>
    %c0_36 = arith.constant 0 : index
    %c0_37 = arith.constant 0 : index
    %56 = vector.load %arg6[%c0_36, %c0_37] : memref<15x128xf32, #tpu.memory_space<vmem>>, vector<2x128xf32>
    tpu.vector_store %arg6[%c0_36, %c0_37], %55 {strides = array<i32>} : memref<15x128xf32, #tpu.memory_space<vmem>>, vector<2x128xf32>,
    %c4_38 = arith.constant 4 : index
    %c0_39 = arith.constant 0 : index
    %57 = vector.load %arg6[%c4_38, %c0_39] : memref<15x128xf32, #tpu.memory_space<vmem>>, vector<11x128xf32>
    %c0_40 = arith.constant 0 : index
    %c0_41 = arith.constant 0 : index
    %58 = vector.load %arg6[%c0_40, %c0_41] : memref<15x128xf32, #tpu.memory_space<vmem>>, vector<11x128xf32>
    %59 = arith.mulf %57, %58 : vector<11x128xf32>
    %c4_42 = arith.constant 4 : index
    %c0_43 = arith.constant 0 : index
    %60 = vector.load %arg7[%c4_42, %c0_43] : memref<15x128xf32, #tpu.memory_space<vmem>>, vector<11x128xf32>
    tpu.vector_store %arg7[%c4_42, %c0_43], %59 {strides = array<i32>} : memref<15x128xf32, #tpu.memory_space<vmem>>, vector<11x128xf32>,
    %c0_44 = arith.constant 0 : index
    %c0_45 = arith.constant 0 : index
    %61 = vector.load %arg6[%c0_44, %c0_45] : memref<15x128xf32, #tpu.memory_space<vmem>>, vector<4x128xf32>
    %c0_46 = arith.constant 0 : index
    %c0_47 = arith.constant 0 : index
    %62 = vector.load %arg7[%c0_46, %c0_47] : memref<15x128xf32, #tpu.memory_space<vmem>>, vector<4x128xf32>
    tpu.vector_store %arg7[%c0_46, %c0_47], %61 {strides = array<i32>} : memref<15x128xf32, #tpu.memory_space<vmem>>, vector<4x128xf32>,
    %c8 = arith.constant 8 : index
    %c0_48 = arith.constant 0 : index
    %63 = vector.load %arg7[%c8, %c0_48] : memref<15x128xf32, #tpu.memory_space<vmem>>, vector<7x128xf32>
    %c0_49 = arith.constant 0 : index
    %c0_50 = arith.constant 0 : index
    %64 = vector.load %arg7[%c0_49, %c0_50] : memref<15x128xf32, #tpu.memory_space<vmem>>, vector<7x128xf32>
    %65 = arith.mulf %63, %64 : vector<7x128xf32>
    %c8_51 = arith.constant 8 : index
    %c0_52 = arith.constant 0 : index
    %66 = vector.load %arg6[%c8_51, %c0_52] : memref<15x128xf32, #tpu.memory_space<vmem>>, vector<7x128xf32>
    tpu.vector_store %arg6[%c8_51, %c0_52], %65 {strides = array<i32>} : memref<15x128xf32, #tpu.memory_space<vmem>>, vector<7x128xf32>,
    %c0_53 = arith.constant 0 : index
    %c0_54 = arith.constant 0 : index
    %67 = vector.load %arg7[%c0_53, %c0_54] : memref<15x128xf32, #tpu.memory_space<vmem>>, vector<8x128xf32>
    %c0_55 = arith.constant 0 : index
    %c0_56 = arith.constant 0 : index
    %68 = vector.load %arg6[%c0_55, %c0_56] : memref<15x128xf32, #tpu.memory_space<vmem>>, vector<8x128xf32>
    tpu.vector_store %arg6[%c0_55, %c0_56], %67 {strides = array<i32>} : memref<15x128xf32, #tpu.memory_space<vmem>>, vector<8x128xf32>,
    %c0_57 = arith.constant 0 : index
    %c0_58 = arith.constant 0 : index
    %69 = vector.load %arg6[%c0_57, %c0_58] : memref<15x128xf32, #tpu.memory_space<vmem>>, vector<15x128xf32>
    %70 = arith.mulf %36, %69 : vector<15x128xf32>
    %c0_59 = arith.constant 0 : index
    %c0_60 = arith.constant 0 : index
    %71 = vector.load %arg5[%c0_59, %c0_60] : memref<15x128xf32, #tpu.memory_space<vmem>>, vector<15x128xf32>
    tpu.vector_store %arg5[%c0_59, %c0_60], %70 {strides = array<i32>} : memref<15x128xf32, #tpu.memory_space<vmem>>, vector<15x128xf32>,
    %cst_61 = arith.constant 5.000000e-01 : f32
    %72 = vector.broadcast %cst_61 : f32 to vector<15x128xf32>
    %73 = arith.mulf %70, %72 : vector<15x128xf32>
    %cst_62 = arith.constant dense<0.000000e+00> : vector<128xf32>
    %74 = vector.multi_reduction <add>, %70, %cst_62 [0] : vector<15x128xf32> to vector<128xf32>
    %75 = vector.shape_cast %74 : vector<128xf32> to vector<1x128xf32>
    %76 = arith.mulf %73, %6 : vector<15x128xf32>
    %cst_63 = arith.constant dense<0.000000e+00> : vector<128xf32>
    %77 = vector.multi_reduction <add>, %76, %cst_63 [0] : vector<15x128xf32> to vector<128xf32>
    %78 = vector.shape_cast %77 : vector<128xf32> to vector<1x128xf32>
    %79 = arith.divf %78, %75 : vector<1x128xf32>
    %80 = arith.cmpf one, %79, %79 : vector<1x128xf32>
    %cst_64 = arith.constant 0x7F800000 : f32
    %81 = vector.broadcast %cst_64 : f32 to vector<1x128xf32>
    %82 = arith.select %80, %81, %79 : vector<1x128xi1>, vector<1x128xf32>
    %c3 = arith.constant 3 : index
    %c0_65 = arith.constant 0 : index
    %83 = vector.load %arg4[%c3, %c0_65] : memref<6x128xf32, #tpu.memory_space<vmem>>, vector<1x128xf32>
    tpu.vector_store %arg4[%c3, %c0_65], %82 {strides = array<i32>} : memref<6x128xf32, #tpu.memory_space<vmem>>, vector<1x128xf32>,
    %c0_66 = arith.constant 0 : index
    %c0_67 = arith.constant 0 : index
    %c0_68 = arith.constant 0 : index
    %84 = vector.load %arg1[%c0_66, %c0_67, %c0_68] : memref<3x16x128xf32, #tpu.memory_space<vmem>>, vector<1x16x128xf32>
    %85 = vector.shape_cast %84 : vector<1x16x128xf32> to vector<16x128xf32>
    %86 = vector.extract_strided_slice %85 {offsets = [1, 0], sizes = [15, 128], strides = [1, 1]} : vector<16x128xf32> to vector<15x128xf32>
    %87 = vector.extract_strided_slice %85 {offsets = [0, 0], sizes = [15, 128], strides = [1, 1]} : vector<16x128xf32> to vector<15x128xf32>
    %88 = arith.addf %86, %87 : vector<15x128xf32>
    %89 = arith.mulf %73, %88 : vector<15x128xf32>
    %cst_69 = arith.constant dense<0.000000e+00> : vector<128xf32>
    %90 = vector.multi_reduction <add>, %89, %cst_69 [0] : vector<15x128xf32> to vector<128xf32>
    %91 = vector.shape_cast %90 : vector<128xf32> to vector<1x128xf32>
    %cst_70 = arith.constant 2.000000e+00 : f32
    %92 = vector.broadcast %cst_70 : f32 to vector<1x128xf32>
    %93 = arith.mulf %91, %92 : vector<1x128xf32>
    %cst_71 = arith.constant 1.000000e+00 : f32
    %94 = vector.broadcast %cst_71 : f32 to vector<1x128xf32>
    %95 = arith.subf %93, %94 : vector<1x128xf32>
    %c0_72 = arith.constant 0 : index
    %c0_73 = arith.constant 0 : index
    %96 = vector.load %arg4[%c0_72, %c0_73] : memref<6x128xf32, #tpu.memory_space<vmem>>, vector<1x128xf32>
    tpu.vector_store %arg4[%c0_72, %c0_73], %95 {strides = array<i32>} : memref<6x128xf32, #tpu.memory_space<vmem>>, vector<1x128xf32>,
    %c1_74 = arith.constant 1 : index
    %c0_75 = arith.constant 0 : index
    %c0_76 = arith.constant 0 : index
    %97 = vector.load %arg1[%c1_74, %c0_75, %c0_76] : memref<3x16x128xf32, #tpu.memory_space<vmem>>, vector<1x16x128xf32>
    %98 = vector.shape_cast %97 : vector<1x16x128xf32> to vector<16x128xf32>
    %99 = vector.extract_strided_slice %98 {offsets = [1, 0], sizes = [15, 128], strides = [1, 1]} : vector<16x128xf32> to vector<15x128xf32>
    %100 = vector.extract_strided_slice %98 {offsets = [0, 0], sizes = [15, 128], strides = [1, 1]} : vector<16x128xf32> to vector<15x128xf32>
    %101 = arith.addf %99, %100 : vector<15x128xf32>
    %102 = arith.mulf %73, %101 : vector<15x128xf32>
    %cst_77 = arith.constant dense<0.000000e+00> : vector<128xf32>
    %103 = vector.multi_reduction <add>, %102, %cst_77 [0] : vector<15x128xf32> to vector<128xf32>
    %104 = vector.shape_cast %103 : vector<128xf32> to vector<1x128xf32>
    %cst_78 = arith.constant 2.000000e+00 : f32
    %105 = vector.broadcast %cst_78 : f32 to vector<1x128xf32>
    %106 = arith.mulf %104, %105 : vector<1x128xf32>
    %cst_79 = arith.constant 1.000000e+00 : f32
    %107 = vector.broadcast %cst_79 : f32 to vector<1x128xf32>
    %108 = arith.subf %106, %107 : vector<1x128xf32>
    %c1_80 = arith.constant 1 : index
    %c0_81 = arith.constant 0 : index
    %109 = vector.load %arg4[%c1_80, %c0_81] : memref<6x128xf32, #tpu.memory_space<vmem>>, vector<1x128xf32>
    tpu.vector_store %arg4[%c1_80, %c0_81], %108 {strides = array<i32>} : memref<6x128xf32, #tpu.memory_space<vmem>>, vector<1x128xf32>,
    %c2_82 = arith.constant 2 : index
    %c0_83 = arith.constant 0 : index
    %c0_84 = arith.constant 0 : index
    %110 = vector.load %arg1[%c2_82, %c0_83, %c0_84] : memref<3x16x128xf32, #tpu.memory_space<vmem>>, vector<1x16x128xf32>
    %111 = vector.shape_cast %110 : vector<1x16x128xf32> to vector<16x128xf32>
    %112 = vector.extract_strided_slice %111 {offsets = [1, 0], sizes = [15, 128], strides = [1, 1]} : vector<16x128xf32> to vector<15x128xf32>
    %113 = vector.extract_strided_slice %111 {offsets = [0, 0], sizes = [15, 128], strides = [1, 1]} : vector<16x128xf32> to vector<15x128xf32>
    %114 = arith.addf %112, %113 : vector<15x128xf32>
    %115 = arith.mulf %73, %114 : vector<15x128xf32>
    %cst_85 = arith.constant dense<0.000000e+00> : vector<128xf32>
    %116 = vector.multi_reduction <add>, %115, %cst_85 [0] : vector<15x128xf32> to vector<128xf32>
    %117 = vector.shape_cast %116 : vector<128xf32> to vector<1x128xf32>
    %cst_86 = arith.constant 2.000000e+00 : f32
    %118 = vector.broadcast %cst_86 : f32 to vector<1x128xf32>
    %119 = arith.mulf %117, %118 : vector<1x128xf32>
    %cst_87 = arith.constant 1.000000e+00 : f32
    %120 = vector.broadcast %cst_87 : f32 to vector<1x128xf32>
    %121 = arith.subf %119, %120 : vector<1x128xf32>
    %c2_88 = arith.constant 2 : index
    %c0_89 = arith.constant 0 : index
    %122 = vector.load %arg4[%c2_88, %c0_89] : memref<6x128xf32, #tpu.memory_space<vmem>>, vector<1x128xf32>
    tpu.vector_store %arg4[%c2_88, %c0_89], %121 {strides = array<i32>} : memref<6x128xf32, #tpu.memory_space<vmem>>, vector<1x128xf32>,
    return
  }
  func.func @transform_0(%arg0: i32) -> (i32, i32, i32) {
    %c0_i32 = arith.constant 0 : i32
    %c0_i32_0 = arith.constant 0 : i32
    %c0_i32_1 = arith.constant 0 : i32
    return %c0_i32, %c0_i32_0, %arg0 : i32, i32, i32
  }
  func.func @transform_1(%arg0: i32) -> (i32, i32) {
    %c0_i32 = arith.constant 0 : i32
    %c0_i32_0 = arith.constant 0 : i32
    return %c0_i32, %arg0 : i32, i32
  }
  func.func @transform_2(%arg0: i32) -> (i32, i32) {
    %c0_i32 = arith.constant 0 : i32
    %c0_i32_0 = arith.constant 0 : i32
    return %c0_i32, %arg0 : i32, i32
  }
  func.func @transform_3(%arg0: i32) -> (i32, i32) {
    %c0_i32 = arith.constant 0 : i32
    %c0_i32_0 = arith.constant 0 : i32
    return %c0_i32, %arg0 : i32, i32
  }
  func.func @transform_4(%arg0: i32) -> (i32, i32) {
    %c0_i32 = arith.constant 0 : i32
    %c0_i32_0 = arith.constant 0 : i32
    return %c0_i32, %arg0 : i32, i32
  }
}

</mosaic_0001>

<bundles_post_ra>
// kernel: tpu_custom_call.1
= control target key start
LH: loop header
LB: loop body
LE: loop exit
PB: predicated region body
PF: predicated region fallthrough
CT: control target
= control target key end

     0   :  { %s1406_s0 = inlined_call_operand.hbm [shape: f32[3,16,256], index: 0, kind: input, shape index: {}]   ;;  %s1407_s1 = inlined_call_operand.hbm [shape: f32[16,256], index: 1, kind: input, shape index: {}]   ;;  %s1408_s2 = inlined_call_operand.hbm [shape: f32[16,256], index: 2, kind: input, shape index: {}]   ;;  %s1409_s3 = inlined_call_operand.hbm [shape: f32[6,256], index: 3, kind: output, shape index: {0}]   ;;  %s1410_s4 = inlined_call_operand.hbm [shape: f32[15,256], index: 4, kind: output, shape index: {1}]  }
   0x1   :  { %1420 = sst [smem:[#allocation20_spill]] %s1407_s1 }
   0x2   :  { %10 = vsyncpa [#allocation5], 0 }
   0x3   :  { %12 = vsyncpa [#allocation5 + $0x1], 0 }
   0x4   :  { %13 = vsyncpa [#allocation8], 0 }
   0x5   :  { %15 = vsyncpa [#allocation8 + $0x1], 0 }
   0x6   :  { %16 = vsyncpa [#allocation6], 0 }
   0x7   :  { %18 = vsyncpa [#allocation6 + $0x1], 0 }
   0x8   :  { %19 = vsyncpa [#allocation12], 0 }
   0x9   :  { %21 = vsyncpa [#allocation12 + $0x1], 0  ;;  %s1105_s15 = smov 0   ;;  %s1107_s16 = smov 0  }
   0xa   :  { %s1109_s17 = smov 0   ;;  %s1111_s18 = smov 0  }
   0xb LB: > { %1421 = sst [smem:[#allocation17_spill]] %s1067_s17  ;;  %s1126_s19 = sadd.s32 4294967295, %s1071_s18   ;;  %s1071_s18 = sphi %s1111_s18, %s1434_s18   ;;  %s1067_s17 = sphi %s1109_s17, %s1436_s17   ;;  %s1063_s16 = sphi %s1107_s16, %s1438_s16   ;;  %s1059_s15 = sphi %s1105_s15, %s1437_s15  }
   0xc   : > { %s767_s20 = sadd.s32 4294967294, %s1071_s18   ;;  %s1130_s21 = sadd.s32 1, %s1071_s18  }
   0xd   : > { %1422 = sst [smem:[#allocation18_spill]] %s1130_s21  ;;  %s34_s22 = sadd.s32 1, %s1067_s17 }
   0xe   : > { %s31_s23 = ssub.s32 %s1071_s18, %s1130_s21  ;;  %p41_p0 = scmp.ne.s32.totalorder %s1067_s17, %s1063_s16 }
   0xf   : > { %p32_p1 = scmp.eq.s32.totalorder %s31_s23, 0  ;;  %p42_p2 = scmp.eq.s32.totalorder %s1071_s18, 0 }
  0x10   : > { %p47_p3 = scmp.ne.s32.totalorder %s1063_s16, %s1059_s15  ;;  %p48_p4 = scmp.eq.s32.totalorder %s1126_s19, 0 }
  0x11   : > { %s1142_s24 = scalar_select %p32_p1, %s1067_s17, %s34_s22  }
  0x12   : > { %p43_p5 = por %p42_p2, %p41_p0  ;;  %p1144_p6 = por %p48_p4, %p47_p3 }
  0x13   : > { %1423 = sst [smem:[#allocation19_spill]] %s1142_s24  ;;  %p123_p7 = scmp.eq.s32.totalorder %s1126_s19, 1 }
  0x14   : > { %p129_p8 = scmp.eq.s32.totalorder %s767_s20, 1  ;;  %p824_p10 = scmp.lt.s32.totalorder %s1071_s18, 2 }
  0x15   : > { %p1151_p11 = por %p123_p7, %p41_p0  ;;  %s1160_s28 = sand.u32 1, %s1067_s17  }
  0x16   : > { %p1155_p12 = por %p129_p8, %p47_p3  ;;  %s1163_s29 = sshll.u32 %s1071_s18, 3 }
  0x17   : > { %p1165_p13 = pnand %p824_p10, %p43_p5  ;;  %s196_s5 = sand.u32 1, %s1071_s18  }
  0x18   : > { %s771_s6 = sshll.u32 %s1160_s28, 4  ;;  %s1428_s1 = sld [smem:[#allocation20_spill]] }
  0x19   : > { %s200_s11 = scalar_lea.vmem [#allocation7], %s771_s6  ;;  %s1177_s13 = scalar_lea.sflag [#allocation8], %s196_s5 }
  0x1a   : > { %s207_s12 = sshll.u32 %s200_s11, 4  ;;  %p883_p1 = pneg %p1165_p13  ;;  %s208_s12 = int_to_ptr.vmem [resolvable:$true] %s207_s12 }
  0x1e   : > { %s204_s9 = scalar_lea.hbm %s1428_s1, %s1163_s29  ;;  %s886_s7 = scalar_lea.hbm %s1428_s1, 32 }
  0x1f   : > { %s205_s10 = sshll.u32 %s204_s9, 4  ;;  %s206_s10 = int_to_ptr.hbm [resolvable:$true] %s205_s10 }
  0x20   : > { %s879_s14 = sshra.s32 %s206_s10, 4  ;;  %s880_s14 = int_to_ptr.hbm [resolvable:$true] %s879_s14 }
  0x21   : > { %s881_s20 = scalar_lea.hbm %s880_s14, 16  ;;  %p887_p4 = scmp.lt.s32.totalorder %s880_s14, %s1428_s1 }
  0x22   : > { %p882_p0 = scmp.ne.s32.totalorder %s880_s14, %s881_s20  ;;  %p888_p5 = scmp.lt.s32.totalorder %s886_s7, %s881_s20 }
  0x24   : > { %p884_p2 = pnand %p883_p1, %p882_p0  ;;  %p889_p7 = por %p888_p5, %p887_p4 }
  0x26   : > { %p885_p3 = pneg %p884_p2 }
  0x28   : > { %p890_p8 = pnand %p889_p7, %p885_p3 }
  0x2a   : > { %893 = shalt.err (!%p890_p8)
}
  0x2b   : > { %s1411_s5 = smov 256   ;;  %s1413_s11 = smov 128  }
  0x2c   : > { %s1415_s22 = smov 8   ;;  %p775_p10 = scmp.ge.s32.totalorder %s1071_s18, 1 }
  0x2d   : > { %813 = dma.hbm_to_vmem [thread:$0]  (!%p1165_p13), %s206_s10, 256, %s208_s12, %s1177_s13, %s1411_s5, %s1413_s11, %s1415_s22  }
  0x2e   : > { %s221_s14 = scalar_lea.vmem [#allocation9], %s771_s6  ;;  %p236_p0 = scmp.lt.s32.totalorder %s1071_s18, 3 }
  0x2f   : > { %s228_s20 = sshll.u32 %s221_s14, 4  ;;  %s795_s7 = smul.u32 48, %s1160_s28  ;;  %s1200_s20 = int_to_ptr.vmem [resolvable:$true] %s228_s20 }
  0x30   : > { %p1202_p2 = pnand %p775_p10, %p236_p0  ;;  %s183_s1 = scalar_lea.hbm %s1406_s0, %s1163_s29 }
  0x31   : > { %s225_s12 = scalar_lea.hbm %s1408_s2, %s1163_s29  ;;  %s184_s5 = sshll.u32 %s183_s1, 4  ;;  %s185_s5 = int_to_ptr.hbm [resolvable:$true] %s184_s5 }
  0x32   : > { %s179_s6 = scalar_lea.vmem [#allocation4], %s795_s7  ;;  %s1215_s11 = sshll.u32 %s225_s12, 4  ;;  %s227_s11 = int_to_ptr.hbm [resolvable:$true] %s1215_s11 }
  0x33   : > { %s186_s14 = sshll.u32 %s179_s6, 4  ;;  %s176_s22 = scalar_lea.sflag [#allocation5], %s1160_s28  ;;  %s187_s14 = int_to_ptr.vmem [resolvable:$true] %s186_s14 }
  0x34   : > { %s909_s17 = sshra.s32 %s185_s5, 4  ;;  %s916_s24 = scalar_lea.hbm %s1406_s0, 96  ;;  %s910_s17 = int_to_ptr.hbm [resolvable:$true] %s909_s17 }
  0x35   : > { %s911_s21 = scalar_lea.hbm %s910_s17, 48  ;;  %p917_p7 = scmp.lt.s32.totalorder %s910_s17, %s1406_s0 }
  0x36   : > { %p912_p3 = scmp.ne.s32.totalorder %s910_s17, %s911_s21  ;;  %p918_p8 = scmp.lt.s32.totalorder %s916_s24, %s911_s21 }
  0x38   : > { %p914_p4 = pnand %p912_p3, %p883_p1  ;;  %p919_p10 = por %p918_p8, %p917_p7 }
  0x3a   : > { %p915_p5 = pneg %p914_p4 }
  0x3c   : > { %p920_p0 = pnand %p919_p10, %p915_p5 }
  0x3e   : > { %923 = shalt.err (!%p920_p0)
}
  0x3f   : > { %s1430_s28 = smov 8   ;;  %s1431_s7 = smov 128  }
  0x40   : > { %s1432_s10 = smov 256   ;;  %s939_s12 = sshra.s32 %s227_s11, 4  ;;  %s940_s12 = int_to_ptr.hbm [resolvable:$true] %s939_s12 }
  0x41   : > { %810 = dma.hbm_to_vmem [thread:$0]  (!%p1165_p13), %s185_s5, 768, %s187_s14, %s176_s22, %s1432_s10, %s1431_s7, %s1430_s28  }
  0x42   : > { %s941_s6 = scalar_lea.hbm %s940_s12, 16  ;;  %s946_s8 = scalar_lea.hbm %s1408_s2, 32 }
  0x43   : > { %p942_p3 = scmp.ne.s32.totalorder %s940_s12, %s941_s6  ;;  %p947_p5 = scmp.lt.s32.totalorder %s940_s12, %s1408_s2 }
  0x44   : > { %p948_p7 = scmp.lt.s32.totalorder %s946_s8, %s941_s6 }
  0x45   : > { %p944_p4 = pnand %p942_p3, %p883_p1 }
  0x46   : > { %p949_p8 = por %p948_p7, %p947_p5 }
  0x47   : > { %p945_p9 = pneg %p944_p4 }
  0x49   : > { %p950_p10 = pnand %p949_p8, %p945_p9 }
  0x4b   : > { %953 = shalt.err (!%p950_p10)
}
  0x4c   : > { %816 = dma.hbm_to_vmem [thread:$0]  (!%p1165_p13), %s227_s11, 256, %s1200_s20, %s1177_s13, %s1432_s10, %s1431_s7, %s1430_s28  }
  0x4d   : > { %240 = sbr.rel (%p1202_p2) target bundleno = 238 (0xee), region = 32  ;;  %s1252_s5 = sand.u32 (!%p1202_p2), 1, %s1063_s16  }
  0x4e   : > { %s796_s22 = smul.u32 (!%p1202_p2), 48, %s1252_s5  ;;  %s243_s14 = scalar_lea.sflag (!%p1202_p2), [#allocation5], %s1252_s5 }
  0x50   : > { %s1256_s1 = scalar_lea.vmem (!%p1202_p2), [#allocation4], %s796_s22 }
  0x52   : > { %1042 = dma.done.wait (%p1144_p6), %s243_s14, 768  }
  0x53   : > { %1044 = vsyncadd (%p1144_p6), %s243_s14, 4294966528  ;;  %s252_s30 = sand.u32 1, %s1126_s19   ;;  %s1264_s13 = sshll.u32 %s1252_s5, 4 }
  0x54   : > { %s253_s11 = scalar_lea.sflag [#allocation8], %s252_s30  ;;  %s256_s20 = scalar_lea.vmem [#allocation7], %s1264_s13 }
  0x55   : > { %1046 = dma.done.wait (%p1144_p6), %s253_s11, 512  }
  0x56   : > { %1048 = vsyncadd (%p1144_p6), %s253_s11, 4294966784  ;;  %v1076_v0 = vmov 1.0   ;;  %v337_v1 = vld [vmem:[%s256_s20] sm:$0xff]  ;;  %vm311_vm0 = vcmask 1040384   ;;  %v338_v3 = vld [vmem:[%s256_s20 + $0x8] sm:$0xff]  ;;  %s266_s25 = scalar_lea.vmem [#allocation9], %s1264_s13 }
  0x57   : > { %384 = vst [vmem:[#allocation2] sm:$0x1] %v1076_v0  ;;  %v341_v2 = vrot.slane %v337_v1, 7  ;;  %v342_v4 = vrot.slane %v338_v3, 7  ;;  %v1273_v23 = vld [vmem:[%s266_s25] sm:$0xff]  ;;  %v1275_v24 = vld [vmem:[%s266_s25 + $0x8] sm:$0xff] }
  0x58   : > { %v1278_v25 = vrot.slane %v1273_v23, 7  ;;  %v313_v26 = vrot.slane %v1275_v24, 7  ;;  %s1300_s23 = scalar_lea.vmem [#allocation11], %s1264_s13  ;;  %s791_s29 = sshll.u32 %s1126_s19, 3  ;;  %vm440_vm1 = vcmask 1046528  }
  0x59   : > { %v346_v5 = vadd.f32 %v341_v2, %v337_v1  ;;  %v343_v6 = vsel %vm311_vm0, %v341_v2, %v342_v4  ;;  %s614_s10 = scalar_lea.hbm %s1410_s4, %s791_s29  ;;  %s615_s12 = sshll.u32 %s1300_s23, 4  ;;  %s1325_s12 = int_to_ptr.vmem [resolvable:$true] %s615_s12 }
  0x5a   : > { %v347_v8 = vadd.f32 %v343_v6, %v338_v3  ;;  %v1283_v32 = vsel %vm311_vm0, %v1278_v25, %v313_v26  ;;  %v317_v33 = vsub.f32 %v1273_v23, %v1278_v25  ;;  %s617_s6 = sshll.u32 %s614_s10, 4  ;;  %s590_s17 = scalar_lea.sflag [#allocation12], %s1252_s5  ;;  %s1331_s6 = int_to_ptr.hbm [resolvable:$true] %s617_s6 }
  0x5b   : > { %v348_v7 = vmul.f32 0.5, %v346_v5  ;;  %v318_v37 = vsub.f32 %v1275_v24, %v1283_v32  ;;  %s983_s21 = sshra.s32 %s1331_s6, 4  ;;  %s989_s22 = scalar_lea.hbm %s1410_s4, 32  ;;  %s984_s21 = int_to_ptr.hbm [resolvable:$true] %s983_s21 }
  0x5c   : > { %v349_v10 = vmul.f32 0.5, %v347_v8  ;;  %s985_s8 = scalar_lea.hbm %s984_s21, 16  ;;  %p990_p1 = scmp.lt.s32.totalorder %s984_s21, %s1410_s4 }
  0x5d   : > { %v780_v9 = vadd.f32 -1.0, %v348_v7  ;;  %p986_p6 = scmp.ne.s32.totalorder %s984_s21, %s985_s8  ;;  %p991_p2 = scmp.lt.s32.totalorder %s989_s22, %s985_s8 }
  0x5e   : > { %v781_v12 = vadd.f32 -1.0, %v349_v10  ;;  %v395_v22 = vld [vmem:[#allocation2] sm:$0x1] }
  0x5f   : > { %v354_v11 = vand.u32 2147483647, %v780_v9  ;;  %396 = vst [vmem:[#allocation3] sm:$0x1] %v395_v22  ;;  %v352_v27 = vmax.f32 %v780_v9, 0.0  ;;  %v787_v22 = vld [vmem:[%s1256_s1 + $0x28] sm:$0xff]  ;;  %p987_p9 = pnand %p986_p6, %p1151_p11  ;;  %p992_p0 = por %p991_p2, %p990_p1 }
  0x60   : > { %v355_v14 = vand.u32 2147483647, %v781_v12  ;;  %v353_v30 = vmax.f32 %v781_v12, 0.0 }
  0x61   : > { %v356_v13 = vsub.f32 0.0, %v354_v11  ;;  %p988_p13 = pneg %p987_p9 }
  0x62   : > { %v357_v16 = vsub.f32 0.0, %v355_v14  ;;  %v489_v14 = vld [vmem:[%s1256_s1] sm:$0xff] }
  0x63   : > { %v358_v15 = vmul.f32 1.442695, %v356_v13  ;;  %p993_p3 = pnand %p992_p0, %p988_p13 }
  0x64   : > { %v360_v17 = vmul.f32 1.442695, %v357_v16  ;;  %v490_v16 = vld [vmem:[%s1256_s1 + $0x8] sm:$0xff] }
  0x65   : > { %865 = vpow2.f32 %v358_v15  ;;  %v783_v15 = vld [vmem:[%s1256_s1 + $0x10] sm:$0xff] }
  0x66   : > { %867 = vpow2.f32 %v360_v17  ;;  %v786_v17 = vld [vmem:[%s1256_s1 + $0x20] sm:$0xff] }
  0x67   : > { %v557_v26 = vrot.slane %v786_v17, 7 }
  0x6b   : > { %v866_v18 = vpop.eup %865 }
  0x6c   : > { %v362_v19 = vadd.f32 1.0, %v866_v18  ;;  %v868_v20 = vpop.eup %867  ;;  %v784_v18 = vld [vmem:[%s1256_s1 + $0x18] sm:$0xff] }
  0x6d   : > { %v363_v21 = vadd.f32 1.0, %v868_v20  ;;  %v525_v20 = vrot.slane %v783_v15, 7 }
  0x6e   : > { %869 = vlog2.f32 %v362_v19  ;;  %v493_v19 = vrot.slane %v489_v14, 7 }
  0x6f   : > { %871 = vlog2.f32 %v363_v21  ;;  %v494_v21 = vrot.slane %v490_v16, 7 }
  0x74   : > { %v870_v28 = vpop.eup %869 }
  0x75   : > { %v365_v29 = vmul.f32 0.6931472, %v870_v28  ;;  %v872_v31 = vpop.eup %871  ;;  %v319_v28 = vadd.f32 %v1278_v25, %v1273_v23  ;;  %v562_v25 = vadd.f32 %v786_v17, %v557_v26 }
  0x76   : > { %v367_v35 = vmul.f32 0.6931472, %v872_v31  ;;  %v498_v31 = vadd.f32 %v493_v19, %v489_v14 }
  0x77   : > { %v368_v34 = vadd.f32 %v365_v29, %v352_v27  ;;  %v526_v27 = vrot.slane %v784_v18, 7  ;;  %v558_v29 = vrot.slane %v787_v22, 7 }
  0x78   : > { %v369_v38 = vadd.f32 %v367_v35, %v353_v30 }
  0x79   : > { %v370_v36 = vsub.f32 0.0, %v368_v34  ;;  %v495_v34 = vsel %vm311_vm0, %v493_v19, %v494_v21 }
  0x7a   : > { %v371_v40 = vsub.f32 0.0, %v369_v38  ;;  %v320_v38 = vadd.f32 %v1283_v32, %v1275_v24 }
  0x7b   : > { %v372_v39 = vmul.f32 %v370_v36, %v317_v33  ;;  %v530_v33 = vadd.f32 %v783_v15, %v525_v20  ;;  %v321_v36 = vmin.f32 %v1273_v23, %v1275_v24 }
  0x7c   : > { %v373_v42 = vmul.f32 %v371_v40, %v318_v37  ;;  %v329_v37 = vmax.f32 %v1273_v23, %v1275_v24  ;;  %v527_v40 = vsel %vm311_vm0, %v525_v20, %v526_v27 }
  0x7d   : > { %v374_v41 = vmul.f32 1.442695, %v372_v39  ;;  %v531_v32 = vadd.f32 %v784_v18, %v527_v40 }
  0x7e   : > { %v376_v43 = vmul.f32 1.442695, %v373_v42  ;;  %v559_v42 = vsel %vm311_vm0, %v557_v26, %v558_v29 }
  0x7f   : > { %873 = vpow2.f32 %v374_v41  ;;  %v499_v41 = vadd.f32 %v495_v34, %v490_v16 }
  0x80   : > { %875 = vpow2.f32 %v376_v43  ;;  %v322_v43 = vrot.slane %v321_v36, 4 }
  0x85   : > { %v874_v44 = vpop.eup %873 }
  0x86   : > { %v378_v45 = vsub.f32 1.0, %v874_v44  ;;  %v1289_v46 = vpop.eup %875  ;;  %v330_v44 = vrot.slane %v329_v37, 4 }
  0x87   : > { %v379_v48 = vsub.f32 1.0, %v1289_v46 }
  0x88   : > { %v380_v47 = vsub.f32 1.0, %v378_v45 }
  0x89   : > { %v381_v50 = vsub.f32 1.0, %v379_v48 }
  0x8a   : > { %v382_v49 = vadd.f32 1e-10, %v380_v47 }
  0x8b   : > { %v383_v51 = vadd.f32 1e-10, %v381_v50  ;;  %v323_v50 = vmin.f32 %v321_v36, %v322_v43 }
  0x8c   : > { %385 = vst [vmem:[#allocation2] sm:$0xfe] %v382_v49 }
  0x8d   : > { %386 = vst [vmem:[#allocation2 + $0x8] sm:$0x7f] %v383_v51  ;;  %v331_v51 = vmax.f32 %v329_v37, %v330_v44 }
  0x93   : > { %v389_v52 = vld [vmem:[#allocation2] sm:$0xff] }
  0x94   : > { %v387_v53 = vld [vmem:[#allocation2 + $0x1] sm:$0xff]  ;;  %v388_v54 = vld [vmem:[#allocation2 + $0x9] sm:$0x3f] }
  0x95   : > { %v390_v55 = vld [vmem:[#allocation2 + $0x8] sm:$0x3f]  ;;  %v391_v56 = vmul.f32 %v389_v52, %v387_v53 }
  0x96   : > { %v392_v57 = vmul.f32 %v390_v55, %v388_v54  ;;  %v563_v54 = vadd.f32 %v787_v22, %v559_v42 }
  0x97   : > { %393 = vst [vmem:[#allocation3 + $0x1] sm:$0xff] %v391_v56 }
  0x98   : > { %394 = vst [vmem:[#allocation3 + $0x9] sm:$0x3f] %v392_v57  ;;  %v324_v57 = vrot.slane %v323_v50, 2 }
  0x9e   : > { %v399_v58 = vld [vmem:[#allocation3] sm:$0xff] }
  0x9f   : > { %v405_v59 = vld [vmem:[#allocation3] sm:$0x3]  ;;  %v397_v60 = vld [vmem:[#allocation3 + $0x2] sm:$0xff]  ;;  %v398_v61 = vld [vmem:[#allocation3 + $0xa] sm:$0x1f] }
  0xa0   : > { %406 = vst [vmem:[#allocation2] sm:$0x3] %v405_v59  ;;  %v401_v62 = vmul.f32 %v399_v58, %v397_v60  ;;  %v400_v63 = vld [vmem:[#allocation3 + $0x8] sm:$0x1f]  ;;  %v332_v58 = vrot.slane %v331_v51, 2 }
  0xa1   : > { %v402_v0 = vmul.f32 %v400_v63, %v398_v61 }
  0xa2   : > { %403 = vst [vmem:[#allocation2 + $0x2] sm:$0xff] %v401_v62 }
  0xa3   : > { %404 = vst [vmem:[#allocation2 + $0xa] sm:$0x1f] %v402_v0 }
  0xa9   : > { %v409_v1 = vld [vmem:[#allocation2] sm:$0xff] }
  0xaa   : > { %v415_v2 = vld [vmem:[#allocation2] sm:$0xf]  ;;  %v407_v3 = vld [vmem:[#allocation2 + $0x4] sm:$0xff]  ;;  %v408_v4 = vld [vmem:[#allocation2 + $0xc] sm:$0x7] }
  0xab   : > { %416 = vst [vmem:[#allocation3] sm:$0xf] %v415_v2  ;;  %v411_v5 = vmul.f32 %v409_v1, %v407_v3  ;;  %v410_v6 = vld [vmem:[#allocation2 + $0x8] sm:$0x7] }
  0xac   : > { %v412_v7 = vmul.f32 %v410_v6, %v408_v4 }
  0xad   : > { %413 = vst [vmem:[#allocation3 + $0x4] sm:$0xff] %v411_v5 }
  0xae   : > { %414 = vst [vmem:[#allocation3 + $0xc] sm:$0x7] %v412_v7 }
  0xb4   : > { %v418_v8 = vld [vmem:[#allocation3] sm:$0x7f] }
  0xb5   : > { %v421_v9 = vld [vmem:[#allocation3] sm:$0xff]  ;;  %v417_v10 = vld [vmem:[#allocation3 + $0x8] sm:$0x7f] }
  0xb6   : > { %422 = vst [vmem:[#allocation2] sm:$0xff] %v421_v9  ;;  %v427_v11 = vrot.slane %v421_v9, 7  ;;  %v419_v12 = vmul.f32 %v418_v8, %v417_v10 }
  0xb8   : > { %v1294_v13 = vmul.f32 %v427_v11, %v378_v45  ;;  %420 = vst [vmem:[#allocation2 + $0x8] sm:$0x7f] %v419_v12 }
  0xba   : > { %434 = vst [vmem:[%s1300_s23 - $0x1] sm:$0xfe] %v1294_v13  ;;  %v436_v30 = vmul.f32 0.5, %v1294_v13  ;;  %v441_v52 = vrot.slane %v1294_v13, 1 }
  0xbc   : > { %v1328_v45 = vmul.f32 %v436_v30, %v319_v28  ;;  %v500_v47 = vmul.f32 %v498_v31, %v436_v30  ;;  %v532_v23 = vmul.f32 %v530_v33, %v436_v30  ;;  %v564_v53 = vmul.f32 %v562_v25, %v436_v30 }
  0xbe   : > { %v458_v59 = vrot.slane %v1328_v45, 1  ;;  %v504_v46 = vrot.slane %v500_v47, 1 }
  0xbf   : > { %v424_v35 = vld [vmem:[#allocation2 + $0x8] sm:$0x7f] }
  0xc0   : > { %v428_v39 = vrot.slane %v424_v35, 7 }
  0xc2   : > { %v429_v49 = vsel %vm311_vm0, %v427_v11, %v428_v39 }
  0xc3   : > { %v433_v24 = vmul.f32 %v429_v49, %v379_v48  ;;  %v536_v48 = vrot.slane %v532_v23, 1 }
  0xc5   : > { %435 = vst [vmem:[%s1300_s23 + $0x7] sm:$0xff] %v433_v24  ;;  %v437_v55 = vmul.f32 0.5, %v433_v24  ;;  %v442_v56 = vrot.slane %v433_v24, 1 }
  0xc6   : > { %996 = shalt.err (!%p993_p3)
}
  0xc7   : > { %s1077_s30 = smov 128   ;;  %s1078_s13 = smov 256   ;;  %v443_v60 = vsel %vm440_vm1, %v441_v52, %v442_v56  ;;  %v446_v61 = vsel %vm440_vm1, %v442_v56, 0.0  ;;  %v501_v62 = vmul.f32 %v499_v41, %v437_v55  ;;  %v533_v63 = vmul.f32 %v531_v32, %v437_v55 }
  0xc8   : > { %s1079_s11 = smov 8   ;;  %v447_v0 = vadd.f32 %v446_v61, %v443_v60  ;;  %v565_v1 = vmul.f32 %v563_v54, %v437_v55  ;;  %v325_v2 = vmin.f32 %v323_v50, %v324_v57  ;;  %v333_v3 = vmax.f32 %v331_v51, %v332_v58  ;;  %s778_s20 = sshll.u32 %s1252_s5, 3 }
  0xc9   : > { %804 = dma.vmem_to_hbm [thread:$0]  (%p1151_p11), %s1325_s12, 256, %s1331_s6, %s590_s17, %s1077_s30, %s1078_s13, %s1079_s11   ;;  %v505_v4 = vrot.slane %v501_v62, 1  ;;  %v537_v5 = vrot.slane %v533_v63, 1  ;;  %v568_v6 = vrot.slane %v564_v53, 1  ;;  %v455_v7 = vmul.f32 %v437_v55, %v320_v38 }
  0xca   : > { %v448_v8 = vrot.slane %v447_v0, 4  ;;  %v569_v9 = vrot.slane %v565_v1, 1  ;;  %v326_v10 = vrot.slane %v325_v2, 1  ;;  %v334_v11 = vrot.slane %v333_v3, 1  ;;  %s1361_s25 = scalar_lea.vmem [#allocation10], %s778_s20  ;;  %s600_s7 = scalar_lea.hbm %s1409_s3, %s791_s29 }
  0xcb   : > { %v506_v12 = vsel %vm440_vm1, %v504_v46, %v505_v4  ;;  %v509_v13 = vsel %vm440_vm1, %v505_v4, 0.0  ;;  %v538_v14 = vsel %vm440_vm1, %v536_v48, %v537_v5  ;;  %v541_v15 = vsel %vm440_vm1, %v537_v5, 0.0  ;;  %s602_s10 = sshll.u32 %s1361_s25, 4  ;;  %s604_s12 = sshll.u32 %s600_s7, 4  ;;  %s603_s10 = int_to_ptr.vmem [resolvable:$true] %s602_s10  ;;  %s605_s12 = int_to_ptr.hbm [resolvable:$true] %s604_s12 }
  0xcc   : > { %v449_v16 = vadd.f32 %v448_v8, %v447_v0  ;;  %v510_v17 = vadd.f32 %v509_v13, %v506_v12  ;;  %v542_v18 = vadd.f32 %v541_v15, %v538_v14  ;;  %v570_v19 = vsel %vm440_vm1, %v568_v6, %v569_v9  ;;  %s585_s19 = scalar_lea.sflag [#allocation6], %s1252_s5  ;;  %s1011_s6 = sshra.s32 %s605_s12, 4  ;;  %s1012_s6 = int_to_ptr.hbm [resolvable:$true] %s1011_s6 }
  0xcd   : > { %v573_v20 = vsel %vm440_vm1, %v569_v9, 0.0  ;;  %v327_v21 = vmin.f32 %v325_v2, %v326_v10  ;;  %v335_v22 = vmax.f32 %v333_v3, %v334_v11  ;;  %v459_v26 = vrot.slane %v455_v7, 1  ;;  %s1013_s17 = scalar_lea.hbm %s1012_s6, 8  ;;  %s1017_s8 = scalar_lea.hbm %s1409_s3, 16 }
  0xce   : > { %v450_v27 = vrot.slane %v449_v16, 2  ;;  %v511_v28 = vrot.slane %v510_v17, 4  ;;  %v543_v29 = vrot.slane %v542_v18, 4  ;;  %v574_v30 = vadd.f32 %v573_v20, %v570_v19  ;;  %p1014_p4 = scmp.ne.s32.totalorder %s1012_s6, %s1013_s17  ;;  %p1018_p8 = scmp.lt.s32.totalorder %s1012_s6, %s1409_s3 }
  0xcf   : > { %328 = vst [vmem:[%s1361_s25 + $0x4] sm:$0x1] %v327_v21  ;;  %v460_v31 = vsel %vm440_vm1, %v458_v59, %v459_v26  ;;  %v463_v33 = vsel %vm440_vm1, %v459_v26, 0.0  ;;  %p1019_p10 = scmp.lt.s32.totalorder %s1017_s8, %s1013_s17 }
  0xd0   : > { %v451_v34 = vadd.f32 %v450_v27, %v449_v16  ;;  %v512_v35 = vadd.f32 %v511_v28, %v510_v17  ;;  %v544_v36 = vadd.f32 %v543_v29, %v542_v18  ;;  %v575_v37 = vrot.slane %v574_v30, 4  ;;  %336 = vst [vmem:[%s1361_s25 + $0x5] sm:$0x1] %v335_v22  ;;  %p1015_p5 = pnand %p1014_p4, %p1151_p11 }
  0xd1   : > { %v464_v38 = vadd.f32 %v463_v33, %v460_v31  ;;  %p1020_p6 = por %p1019_p10, %p1018_p8 }
  0xd2   : > { %v452_v25 = vrot.slane %v451_v34, 1  ;;  %v513_v39 = vrot.slane %v512_v35, 2  ;;  %v545_v40 = vrot.slane %v544_v36, 2  ;;  %v576_v41 = vadd.f32 %v575_v37, %v574_v30  ;;  %p1016_p7 = pneg %p1015_p5 }
  0xd3   : > { %v465_v42 = vrot.slane %v464_v38, 4 }
  0xd4   : > { %v453_v43 = vadd.f32 %v452_v25, %v451_v34  ;;  %v514_v44 = vadd.f32 %v513_v39, %v512_v35  ;;  %v546_v45 = vadd.f32 %v545_v40, %v544_v36  ;;  %v577_v47 = vrot.slane %v576_v41, 2  ;;  %p1021_p9 = pnand %p1020_p6, %p1016_p7 }
  0xd5   : > { %v466_v23 = vadd.f32 %v465_v42, %v464_v38 }
  0xd6   : > { %877 = vrcp.f32 %v453_v43  ;;  %v515_v49 = vrot.slane %v514_v44, 1  ;;  %v547_v24 = vrot.slane %v546_v45, 1  ;;  %v578_v32 = vadd.f32 %v577_v47, %v576_v41 }
  0xd7   : > { %v467_v53 = vrot.slane %v466_v23, 2  ;;  %v482_v63 = vand.u32 2147483648, %v453_v43  ;;  %v480_v2 = vand.u32 2147483647, %v453_v43  ;;  %vm476_vm3 = vweird.f32 %v453_v43 }
  0xd8   : > { %v516_v50 = vadd.f32 %v515_v49, %v514_v44  ;;  %v548_v51 = vadd.f32 %v547_v24, %v546_v45  ;;  %v579_v52 = vrot.slane %v578_v32, 1 }
  0xd9   : > { %v468_v48 = vadd.f32 %v467_v53, %v466_v23  ;;  %v483_v4 = vor.u32 1.1754944e-38, %v482_v63  ;;  %vm481_vm5 = vcmp.eq.f32.partialorder %v480_v2, 8.507059e+37 }
  0xda   : > { %v517_v54 = vmul.f32 2.0, %v516_v50  ;;  %v549_v55 = vmul.f32 2.0, %v548_v51  ;;  %v580_v56 = vadd.f32 %v579_v52, %v578_v32 }
  0xdb   : > { %v469_v0 = vrot.slane %v468_v48, 1 }
  0xdc   : > { %v878_v57 = vpop.eup %877  ;;  %v782_v58 = vadd.f32 -1.0, %v517_v54  ;;  %v785_v59 = vadd.f32 -1.0, %v549_v55  ;;  %v581_v46 = vmul.f32 2.0, %v580_v56 }
  0xdd   : > { %v472_v60 = vmul.f32 %v878_v57, %v453_v43  ;;  %vm477_vm2 = vweird.f32 %v878_v57  ;;  %v470_v5 = vadd.f32 %v469_v0, %v468_v48 }
  0xde   : > { %519 = vst [vmem:[%s1361_s25] sm:$0x1] %v782_v58  ;;  %v788_v61 = vadd.f32 -1.0, %v581_v46  ;;  %vm478_vm4 = vmor %vm476_vm3, %vm477_vm2 }
  0xdf   : > { %551 = vst [vmem:[%s1361_s25 + $0x1] sm:$0x1] %v785_v59  ;;  %v473_v62 = vsub.f32 1.0, %v472_v60 }
  0xe0   : > { %583 = vst [vmem:[%s1361_s25 + $0x2] sm:$0x1] %v788_v61 }
  0xe1   : > { %v474_v1 = vmul.f32 %v878_v57, %v473_v62 }
  0xe3   : > { %v475_v3 = vadd.f32 %v878_v57, %v474_v1 }
  0xe5   : > { %v479_v6 = vsel %vm478_vm4, %v878_v57, %v475_v3 }
  0xe6   : > { %v484_v7 = vsel %vm481_vm5, %v483_v4, %v479_v6 }
  0xe7   : > { %v485_v8 = vmul.f32 %v484_v7, %v470_v5 }
  0xe9   : > { %vm486_vm6 = vcmp.ne.f32.partialorder %v485_v8, %v485_v8 }
  0xea   : > { %v487_v9 = vsel %vm486_vm6, inf, %v485_v8 }
  0xeb   : > { %488 = vst [vmem:[%s1361_s25 + $0x3] sm:$0x1] %v487_v9 }
  0xec   : > { %1024 = shalt.err (!%p1021_p9)
}
  0xed   : > { %803 = dma.vmem_to_hbm [thread:$0]  (%p1151_p11), %s603_s10, 128, %s605_s12, %s585_s19  }
  0xee PF: > { %s632_s5 = sand.u32 1, %s1059_s15   ;;  %p1433_p13 = scmp.ge.s32.totalorder %s1071_s18, 2 }
  0xef   : > { %s633_s22 = scalar_lea.sflag [#allocation6], %s632_s5 }
  0xf0   : > { %p818_p1 = pnand %p1433_p13, %p1155_p12 }
  0xf2   : > { %p819_p2 = pneg %p818_p1 }
  0xf4   : > { %1050 = dma.done.wait (%p819_p2), %s633_s22, 128  }
  0xf5   : > { %1052 = vsyncadd (%p819_p2), %s633_s22, 4294967168  ;;  %s643_s14 = scalar_lea.sflag [#allocation12], %s632_s5 }
  0xf6   : > { %1054 = dma.done.wait (%p819_p2), %s643_s14, 256  }
  0xf7   : > { %1056 = vsyncadd (%p819_p2), %s643_s14, 4294967040  ;;  %s1434_s18 = sld [smem:[#allocation18_spill]]  ;;  %s1437_s15 = smov %s1063_s16 }
  0xf8   : > { %s1435_s1 = sld [smem:[#allocation17_spill]] }
  0xf9   : > { %s1436_s17 = sld [smem:[#allocation19_spill]] }
  0xfd   : > { %p24_p11 = scmp.ge.s32.totalorder %s1434_s18, 4  }
  0xfe   : > { %s1438_s16 = smov %s1435_s1 }
  0xff   :  { %26 = sbr.rel (!%p24_p11) target bundleno = 11 (0xb), region = 120 }
 0x104   :  { %649 = vsyncpa [#allocation5], 1 }
 0x105   :  { %651 = vsyncpa [#allocation5 + $0x1], 1 }
 0x106   :  { %652 = vsyncpa [#allocation8], 1 }
 0x107   :  { %654 = vsyncpa [#allocation8 + $0x1], 1 }
 0x108   :  { %655 = vsyncpa [#allocation6], 1 }
 0x109   :  { %657 = vsyncpa [#allocation6 + $0x1], 1 }
 0x10a   :  { %658 = vsyncpa [#allocation12], 1 }
 0x10b   :  { %660 = vsyncpa [#allocation12 + $0x1], 1 }

</bundles_post_ra>
